<compile_context>
chip_gen: v7x
topology: tpu7x:2x2x1
jax: 0.10.0
libtpu: 0.0.40
codegen_flags: <defaults>
</compile_context>

<pallas_src>
import functools
import math

import jax
import jax.numpy as jnp
from jax.experimental import pallas as pl
from jax.experimental.pallas import tpu as pltpu


def _proj_kernel(h_ref, w_ref, a_ref, wh_ref, s_ref):
    # h:(Tp,Fin)  w:(Fin,Fout)  a:(Fout,2)  ->  wh:(Tp,Fout)  s:(Tp,2)
    wh = jnp.dot(h_ref[...], w_ref[...], preferred_element_type=jnp.float32)
    wh_ref[...] = wh.astype(wh_ref.dtype)
    # fused src/dst attention projections: one MXU push, two output columns
    s_ref[...] = jnp.dot(wh, a_ref[...],
                         preferred_element_type=jnp.float32).astype(s_ref.dtype)


def _attn_kernel(s_src_ref, s_dst_ref, wh_ref, adj_ref, out_ref, *, alpha, concat):
    # s_src:(Ti,1)  s_dst:(1,N)  wh:(N,Fout)  adj:(Ti,N)  out:(Ti,Fout)
    score = s_src_ref[...] + s_dst_ref[...]                   # (Ti, N), j on lanes
    lr = jnp.where(score > 0, score, alpha * score)           # LeakyReLU(alpha)
    # per-edge weight exp(-LeakyReLU(.)) on edges, 0 elsewhere (mask folded in)
    ee = jnp.where(adj_ref[...] != 0, jnp.exp(-lr), 0.0)      # (Ti, N)
    rowsum = jnp.sum(ee, axis=1, keepdims=True)               # (Ti, 1)
    # TODO(synk): F.dropout(edge_e) omitted — layer evaluated in eval mode (identity).
    hp = jnp.dot(ee, wh_ref[...],
                 preferred_element_type=jnp.float32)          # (Ti, Fout)  MXU
    hp = hp / rowsum   # matches torch .div(e_rowsum); isolated nodes -> nan as in torch
    if concat:
        # ELU(alpha=1); clamp the exp argument so the unselected branch can't overflow
        hp = jnp.where(hp > 0, hp, jnp.exp(jnp.minimum(hp, 0.0)) - 1.0)
    out_ref[...] = hp.astype(out_ref.dtype)


def sp_gat_forward(inp, adj, w, a, *, alpha, concat, tile_i=128, tile_p=256):
    n, f_in = inp.shape
    f_out = w.shape[1]
    inp = inp.astype(jnp.float32)
    w = w.astype(jnp.float32)
    # a:(1, 2*Fout) -> (Fout, 2): column 0 = source proj, column 1 = dest proj
    a_mat = jnp.stack([a[0, :f_out], a[0, f_out:]], axis=1).astype(jnp.float32)
    # compact (N, N) edge mask — never broadcast to (N, N, Fout)
    # TODO(synk): an int8 mask would cut this (dominant) HBM stream another 4x.
    adj_mask = (adj != 0).astype(jnp.float32)

    tile_p = max(8, min(tile_p, n))
    tile_i = max(8, min(tile_i, n))

    # ---- kernel 1: projection (Wh and the two fused attention score columns) ----
    wh, s = pl.pallas_call(
        _proj_kernel,
        grid=(pl.cdiv(n, tile_p),),
        in_specs=[
            pl.BlockSpec((tile_p, f_in), lambda p: (p, 0)),
            pl.BlockSpec((f_in, f_out), lambda p: (0, 0)),
            pl.BlockSpec((f_out, 2), lambda p: (0, 0)),
        ],
        out_specs=(
            pl.BlockSpec((tile_p, f_out), lambda p: (p, 0)),
            pl.BlockSpec((tile_p, 2), lambda p: (p, 0)),
        ),
        out_shape=(
            jax.ShapeDtypeStruct((n, f_out), jnp.float32),
            jax.ShapeDtypeStruct((n, 2), jnp.float32),
        ),
        compiler_params=pltpu.CompilerParams(
            dimension_semantics=("parallel",)),
        cost_estimate=pl.CostEstimate(
            flops=2 * n * f_in * f_out + 4 * n * f_out,
            transcendentals=0,
            bytes_accessed=4 * (n * f_in + f_in * f_out + 2 * f_out
                                + n * f_out + 2 * n)),
    )(inp, w, a_mat)

    s_src = s[:, 0:1]                     # (N, 1)  query-node scores
    s_dst_row = s[:, 1:2].reshape(1, n)   # (1, N)  key-node scores, j on lanes

    # ---- kernel 2: masked edge weights + aggregation, tiled over query nodes ----
    h_prime = pl.pallas_call(
        functools.partial(_attn_kernel, alpha=float(alpha), concat=bool(concat)),
        grid=(pl.cdiv(n, tile_i),),
        in_specs=[
            pl.BlockSpec((tile_i, 1), lambda i: (i, 0)),
            pl.BlockSpec((1, n), lambda i: (0, 0)),
            pl.BlockSpec((n, f_out), lambda i: (0, 0)),   # Wh resident across tiles
            pl.BlockSpec((tile_i, n), lambda i: (i, 0)),
        ],
        out_specs=pl.BlockSpec((tile_i, f_out), lambda i: (i, 0)),
        out_shape=jax.ShapeDtypeStruct((n, f_out), jnp.float32),
        compiler_params=pltpu.CompilerParams(
            dimension_semantics=("parallel",),
            vmem_limit_bytes=32 * 1024 * 1024),
        cost_estimate=pl.CostEstimate(
            flops=2 * n * n * f_out + 8 * n * n,
            transcendentals=n * n + n * f_out,
            bytes_accessed=4 * (n * n + n * f_out + 2 * n + n * f_out)),
    )(s_src, s_dst_row, wh, adj_mask)
    return h_prime


class SpGraphAttentionLayer:
    """JAX/Pallas port of the sparse GAT layer (dense-adjacency formulation)."""

    def __init__(self, in_features, out_features, dropout, alpha, concat=True, *, key):
        self.in_features = in_features
        self.out_features = out_features
        self.dropout = dropout   # TODO(synk): dropout on edge_e not applied (eval mode).
        self.alpha = alpha
        self.concat = concat
        kw, ka = jax.random.split(key)
        # nn.init.xavier_normal_(gain=1.414)
        std_w = 1.414 * math.sqrt(2.0 / (in_features + out_features))
        std_a = 1.414 * math.sqrt(2.0 / (1 + 2 * out_features))
        self.W = std_w * jax.random.normal(kw, (in_features, out_features), jnp.float32)
        self.a = std_a * jax.random.normal(ka, (1, 2 * out_features), jnp.float32)

    def __call__(self, inp, adj):
        return sp_gat_forward(inp, adj, self.W, self.a,
                              alpha=self.alpha, concat=self.concat)


if __name__ == "__main__":
    N, IN_F, OUT_F = 256, 16, 32

    root = jax.random.PRNGKey(0)
    k_layer, k_h, k_adj = jax.random.split(root, 3)

    layer = SpGraphAttentionLayer(IN_F, OUT_F, dropout=0.5, alpha=0.2,
                                  concat=True, key=k_layer)

    x = jax.random.normal(k_h, (N, IN_F), jnp.float32)
    adj = (jax.random.uniform(k_adj, (N, N)) > 0.9).astype(jnp.float32)
    adj = jnp.maximum(adj, jnp.eye(N, dtype=jnp.float32))   # self loops (no isolated nodes)

    out = layer(x, adj)
    jax.block_until_ready(out)

    assert out.shape == (N, OUT_F)
    assert bool(jnp.all(jnp.isfinite(out)))
    print("KERNEL_OK")
</pallas_src>

<mosaic_0001>
module attributes {stable_mosaic.version = 11 : i64} {
  func.func @_proj_kernel(%arg0: i32, %arg1: memref<256x16xf32, #tpu.memory_space<vmem>>, %arg2: memref<16x32xf32, #tpu.memory_space<vmem>>, %arg3: memref<32x2xf32, #tpu.memory_space<vmem>>, %arg4: memref<256x32xf32, #tpu.memory_space<vmem>>, %arg5: memref<256x2xf32, #tpu.memory_space<vmem>>) attributes {dimension_semantics = [#tpu.dimension_semantics<parallel>], iteration_bounds = array<i64: 1>, scalar_prefetch = 0 : i64, scratch_operands = 0 : i64, tpu.core_type = #tpu.core_type<tc>, window_params = [{transform_indices = @transform_0, window_bounds = array<i64: 256, 16>}, {pipeline_mode = #tpu.pipeline_mode<synchronous>, transform_indices = @transform_1, window_bounds = array<i64: 16, 32>}, {pipeline_mode = #tpu.pipeline_mode<synchronous>, transform_indices = @transform_2, window_bounds = array<i64: 32, 2>}, {transform_indices = @transform_3, window_bounds = array<i64: 256, 32>}, {transform_indices = @transform_4, window_bounds = array<i64: 256, 2>}]} {
    %c0 = arith.constant 0 : index
    %c0_0 = arith.constant 0 : index
    %0 = vector.load %arg1[%c0, %c0_0] : memref<256x16xf32, #tpu.memory_space<vmem>>, vector<256x16xf32>
    %c0_1 = arith.constant 0 : index
    %c0_2 = arith.constant 0 : index
    %1 = vector.load %arg2[%c0_1, %c0_2] : memref<16x32xf32, #tpu.memory_space<vmem>>, vector<16x32xf32>
    %cst = arith.constant dense<0.000000e+00> : vector<256x32xf32>
    %2 = tpu.matmul %0, %1, %cst {dimension_numbers = #tpu.dot_dimension_numbers<[1], [0], [0], [1], [0, 0, 1, 1], [], []>} : vector<256x16xf32>, vector<16x32xf32>, vector<256x32xf32> -> vector<256x32xf32>
    %c0_3 = arith.constant 0 : index
    %c0_4 = arith.constant 0 : index
    %3 = vector.load %arg4[%c0_3, %c0_4] : memref<256x32xf32, #tpu.memory_space<vmem>>, vector<256x32xf32>
    tpu.vector_store %arg4[%c0_3, %c0_4], %2 {strides = array<i32>} : memref<256x32xf32, #tpu.memory_space<vmem>>, vector<256x32xf32>,
    %c0_5 = arith.constant 0 : index
    %c0_6 = arith.constant 0 : index
    %4 = vector.load %arg3[%c0_5, %c0_6] : memref<32x2xf32, #tpu.memory_space<vmem>>, vector<32x2xf32>
    %cst_7 = arith.constant dense<0.000000e+00> : vector<256x2xf32>
    %5 = tpu.matmul %2, %4, %cst_7 {dimension_numbers = #tpu.dot_dimension_numbers<[1], [0], [0], [1], [0, 0, 1, 1], [], []>} : vector<256x32xf32>, vector<32x2xf32>, vector<256x2xf32> -> vector<256x2xf32>
    %c0_8 = arith.constant 0 : index
    %c0_9 = arith.constant 0 : index
    %6 = vector.load %arg5[%c0_8, %c0_9] : memref<256x2xf32, #tpu.memory_space<vmem>>, vector<256x2xf32>
    tpu.vector_store %arg5[%c0_8, %c0_9], %5 {strides = array<i32>} : memref<256x2xf32, #tpu.memory_space<vmem>>, vector<256x2xf32>,
    return
  }
  func.func @transform_0(%arg0: i32) -> (i32, i32) {
    %c0_i32 = arith.constant 0 : i32
    %c0_i32_0 = arith.constant 0 : i32
    return %arg0, %c0_i32 : i32, i32
  }
  func.func @transform_1(%arg0: i32) -> (i32, i32) {
    %c0_i32 = arith.constant 0 : i32
    %c0_i32_0 = arith.constant 0 : i32
    %c0_i32_1 = arith.constant 0 : i32
    return %c0_i32, %c0_i32_0 : i32, i32
  }
  func.func @transform_2(%arg0: i32) -> (i32, i32) {
    %c0_i32 = arith.constant 0 : i32
    %c0_i32_0 = arith.constant 0 : i32
    %c0_i32_1 = arith.constant 0 : i32
    return %c0_i32, %c0_i32_0 : i32, i32
  }
  func.func @transform_3(%arg0: i32) -> (i32, i32) {
    %c0_i32 = arith.constant 0 : i32
    %c0_i32_0 = arith.constant 0 : i32
    return %arg0, %c0_i32 : i32, i32
  }
  func.func @transform_4(%arg0: i32) -> (i32, i32) {
    %c0_i32 = arith.constant 0 : i32
    %c0_i32_0 = arith.constant 0 : i32
    return %arg0, %c0_i32 : i32, i32
  }
}

</mosaic_0001>

<bundles_post_ra>
// kernel: tpu_custom_call.1
= control target key start
LH: loop header
LB: loop body
LE: loop exit
PB: predicated region body
PF: predicated region fallthrough
CT: control target
= control target key end

     0   :  { %vm50_vm0 = vcmask 130048   ;;  %vm372_vm1 = vcmask 261120   ;;  %vm730_vm2 = vcmask 15360   ;;  %s1484_s1 = inlined_call_operand.vmem [shape: f32[16,32], index: 1, kind: input, shape index: {}]   ;;  %s1485_s0 = inlined_call_operand.vmem [shape: f32[256,16], index: 0, kind: input, shape index: {}]   ;;  %s1486_s2 = inlined_call_operand.vmem [shape: f32[32,2], index: 2, kind: input, shape index: {}]   ;;  %s1487_s3 = inlined_call_operand.vmem [shape: f32[256,32], index: 3, kind: output, shape index: {0}]   ;;  %s1488_s4 = inlined_call_operand.vmem [shape: f32[256,2], index: 4, kind: output, shape index: {1}]  }
   0x1   :  { %v48_v0 = vld [vmem:[%s1484_s1] sm:$0xff]  ;;  %v49_v1 = vld [vmem:[%s1484_s1 + $0x8] sm:$0xff]  ;;  %v18_v5 = vld [vmem:[%s1485_s0 + $0x10] sm:$0xff] }
   0x2   :  { %v16_v2 = vld [vmem:[%s1485_s0] sm:$0xff]  ;;  %v1013_v3 = vpack.c.bf16 %v49_v1, %v48_v0  ;;  %v17_v4 = vld [vmem:[%s1485_s0 + $0x8] sm:$0xff]  ;;  %v19_v6 = vld [vmem:[%s1485_s0 + $0x18] sm:$0xff] }
   0x3   :  { %909 = vmatprep.mubr.msk.f32.mxu0 %vm50_vm0, %v16_v2  ;;  %v20_v7 = vld [vmem:[%s1485_s0 + $0x20] sm:$0xff]  ;;  %v406_v9 = vld [vmem:[%s1486_s2 + $0x8] sm:$0xff]  ;;  %v407_v12 = vld [vmem:[%s1486_s2 + $0x10] sm:$0xff] }
   0x4   :  { %1014 = vmatprep.subr.bf16.mxu0 %v1013_v3  ;;  %v405_v8 = vld [vmem:[%s1486_s2] sm:$0xff]  ;;  %v21_v10 = vld [vmem:[%s1485_s0 + $0x28] sm:$0xff]  ;;  %v408_v13 = vld [vmem:[%s1486_s2 + $0x18] sm:$0xff] }
   0x5   :  { %1016 = vmatpush3.bf16.msra.mxu0 %v1013_v3  ;;  %v1017_v11 = vpack.c.bf16 %v406_v9, %v405_v8  ;;  %v22_v14 = vld [vmem:[%s1485_s0 + $0x30] sm:$0xff]  ;;  %v1021_v15 = vpack.c.bf16 %v408_v13, %v407_v12  ;;  %v23_v16 = vld [vmem:[%s1485_s0 + $0x38] sm:$0xff]  ;;  %v24_v17 = vld [vmem:[%s1485_s0 + $0x40] sm:$0xff] }
   0x6   :  { %v25_v18 = vld [vmem:[%s1485_s0 + $0x48] sm:$0xff]  ;;  %v26_v19 = vld [vmem:[%s1485_s0 + $0x50] sm:$0xff]  ;;  %v27_v20 = vld [vmem:[%s1485_s0 + $0x58] sm:$0xff] }
   0x7   :  { %1018 = vmatprep.subr.bf16.mxu1 %v1017_v11  ;;  %v28_v21 = vld [vmem:[%s1485_s0 + $0x60] sm:$0xff]  ;;  %v29_v22 = vld [vmem:[%s1485_s0 + $0x68] sm:$0xff]  ;;  %v30_v23 = vld [vmem:[%s1485_s0 + $0x70] sm:$0xff] }
   0x8   :  { %910 = vmatmul.mubr.msk.f32.vlgmr.msra.gmra.mrb[0].mxu0 %vm50_vm0, %v17_v4  ;;  %1020 = vmatpush3.bf16.msra.mxu1 %v1017_v11  ;;  %v31_v24 = vld [vmem:[%s1485_s0 + $0x78] sm:$0xff]  ;;  %v32_v25 = vld [vmem:[%s1485_s0 + $0x80] sm:$0xff]  ;;  %v33_v26 = vld [vmem:[%s1485_s0 + $0x88] sm:$0xff] }
   0x9   :  { %912 = vmatprep.mubr.msk.f32.mxu0 %vm50_vm0, %v18_v5  ;;  %1022 = vmatprep.subr.bf16.mxu1 %v1021_v15  ;;  %v34_v27 = vld [vmem:[%s1485_s0 + $0x90] sm:$0xff]  ;;  %v35_v28 = vld [vmem:[%s1485_s0 + $0x98] sm:$0xff]  ;;  %v36_v29 = vld [vmem:[%s1485_s0 + $0xa0] sm:$0xff] }
   0xa   :  { %v37_v30 = vld [vmem:[%s1485_s0 + $0xa8] sm:$0xff]  ;;  %v38_v31 = vld [vmem:[%s1485_s0 + $0xb0] sm:$0xff]  ;;  %v39_v32 = vld [vmem:[%s1485_s0 + $0xb8] sm:$0xff] }
   0xb   :  { %v40_v33 = vld [vmem:[%s1485_s0 + $0xc0] sm:$0xff]  ;;  %v41_v34 = vld [vmem:[%s1485_s0 + $0xc8] sm:$0xff]  ;;  %v42_v35 = vld [vmem:[%s1485_s0 + $0xd0] sm:$0xff] }
   0xc   :  { %913 = vmatmul.mubr.msk.f32.gmra.mrb[2].mxu0 %vm50_vm0, %v19_v6  ;;  %1024 = vmatpush3.bf16.msra.mxu1 %v1021_v15  ;;  %v43_v36 = vld [vmem:[%s1485_s0 + $0xd8] sm:$0xff]  ;;  %v44_v37 = vld [vmem:[%s1485_s0 + $0xe0] sm:$0xff]  ;;  %v45_v38 = vld [vmem:[%s1485_s0 + $0xe8] sm:$0xff] }
   0xd   :  { %915 = vmatprep.mubr.msk.f32.mxu0 %vm50_vm0, %v20_v7  ;;  %v46_v39 = vld [vmem:[%s1485_s0 + $0xf0] sm:$0xff]  ;;  %v47_v40 = vld [vmem:[%s1485_s0 + $0xf8] sm:$0xff] }
  0x10   :  { %916 = vmatmul.mubr.msk.f32.gmra.mrb[4].mxu0 %vm50_vm0, %v21_v10 }
  0x11   :  { %918 = vmatprep.mubr.msk.f32.mxu0 %vm50_vm0, %v22_v14 }
  0x14   :  { %919 = vmatmul.mubr.msk.f32.gmra.mrb[6].mxu0 %vm50_vm0, %v23_v16 }
  0x15   :  { %921 = vmatprep.mubr.msk.f32.mxu0 %vm50_vm0, %v24_v17 }
  0x18   :  { %922 = vmatmul.mubr.msk.f32.gmra.mrb[8].mxu0 %vm50_vm0, %v25_v18 }
  0x19   :  { %924 = vmatprep.mubr.msk.f32.mxu0 %vm50_vm0, %v26_v19 }
  0x1c   :  { %925 = vmatmul.mubr.msk.f32.gmra.mrb[10].mxu0 %vm50_vm0, %v27_v20 }
  0x1d   :  { %927 = vmatprep.mubr.msk.f32.mxu0 %vm50_vm0, %v28_v21 }
  0x20   :  { %928 = vmatmul.mubr.msk.f32.gmra.mrb[12].mxu0 %vm50_vm0, %v29_v22 }
  0x21   :  { %930 = vmatprep.mubr.msk.f32.mxu0 %vm50_vm0, %v30_v23 }
  0x24   :  { %931 = vmatmul.mubr.msk.f32.gmra.mrb[14].mxu0 %vm50_vm0, %v31_v24 }
  0x25   :  { %933 = vmatprep.mubr.msk.f32.mxu0 %vm50_vm0, %v32_v25 }
  0x28   :  { %934 = vmatmul.mubr.msk.f32.gmra.mrb[16].mxu0 %vm50_vm0, %v33_v26 }
  0x29   :  { %936 = vmatprep.mubr.msk.f32.mxu0 %vm50_vm0, %v34_v27 }
  0x2c   :  { %937 = vmatmul.mubr.msk.f32.gmra.mrb[18].mxu0 %vm50_vm0, %v35_v28 }
  0x2d   :  { %939 = vmatprep.mubr.msk.f32.mxu0 %vm50_vm0, %v36_v29 }
  0x30   :  { %940 = vmatmul.mubr.msk.f32.gmra.mrb[20].mxu0 %vm50_vm0, %v37_v30 }
  0x31   :  { %942 = vmatprep.mubr.msk.f32.mxu0 %vm50_vm0, %v38_v31 }
  0x34   :  { %943 = vmatmul.mubr.msk.f32.gmra.mrb[22].mxu0 %vm50_vm0, %v39_v32 }
  0x35   :  { %945 = vmatprep.mubr.msk.f32.mxu0 %vm50_vm0, %v40_v33 }
  0x38   :  { %946 = vmatmul.mubr.msk.f32.gmra.mrb[24].mxu0 %vm50_vm0, %v41_v34 }
  0x39   :  { %948 = vmatprep.mubr.msk.f32.mxu0 %vm50_vm0, %v42_v35 }
  0x3c   :  { %949 = vmatmul.mubr.msk.f32.gmra.mrb[26].mxu0 %vm50_vm0, %v43_v36 }
  0x3d   :  { %951 = vmatprep.mubr.msk.f32.mxu0 %vm50_vm0, %v44_v37 }
  0x40   :  { %952 = vmatmul.mubr.msk.f32.gmra.mrb[28].mxu0 %vm50_vm0, %v45_v38 }
  0x41   :  { %954 = vmatprep.mubr.msk.f32.mxu0 %vm50_vm0, %v46_v39 }
  0x44   :  { %955 = vmatmul.mubr.msk.f32.gmra.mrb[30].mxu0 %vm50_vm0, %v47_v40 }
  0xdb   :  { %v911_v41 = vpop.f32.mrb[0].mxu0 }
  0xdc   :  { %374 = vst.msk [vmem:[%s1487_s3 + $0x8] sm:$0xff] %vm372_vm1, %v911_v41  ;;  %v213_v42 = vpop.f32.mrb[1].mxu0 }
  0xdd   :  { %373 = vst.msk [vmem:[%s1487_s3] sm:$0xff] %vm372_vm1, %v213_v42  ;;  %965 = vmatprep.mubr.msk.f32.mxu1 %vm372_vm1, %v213_v42 }
  0xde   :  { %966 = vmatmul.mubr.msk.f32.vlgmr.msra.gmra.mrb[0].mxu1 %vm372_vm1, %v911_v41 }
  0xdf   :  { %v914_v43 = vpop.f32.mrb[2].mxu0 }
  0xe0   :  { %376 = vst.msk [vmem:[%s1487_s3 + $0x18] sm:$0xff] %vm372_vm1, %v914_v43  ;;  %v223_v44 = vpop.f32.mrb[3].mxu0 }
  0xe1   :  { %375 = vst.msk [vmem:[%s1487_s3 + $0x10] sm:$0xff] %vm372_vm1, %v223_v44  ;;  %968 = vmatprep.mubr.msk.f32.mxu1 %vm372_vm1, %v223_v44 }
  0xe2   :  { %969 = vmatmul.mubr.msk.f32.gmra.mrb[2].mxu1 %vm372_vm1, %v914_v43 }
  0xe3   :  { %v917_v45 = vpop.f32.mrb[4].mxu0 }
  0xe4   :  { %378 = vst.msk [vmem:[%s1487_s3 + $0x28] sm:$0xff] %vm372_vm1, %v917_v45  ;;  %v233_v46 = vpop.f32.mrb[5].mxu0 }
  0xe5   :  { %377 = vst.msk [vmem:[%s1487_s3 + $0x20] sm:$0xff] %vm372_vm1, %v233_v46  ;;  %971 = vmatprep.mubr.msk.f32.mxu1 %vm372_vm1, %v233_v46 }
  0xe6   :  { %972 = vmatmul.mubr.msk.f32.gmra.mrb[4].mxu1 %vm372_vm1, %v917_v45 }
  0xe7   :  { %v920_v47 = vpop.f32.mrb[6].mxu0 }
  0xe8   :  { %380 = vst.msk [vmem:[%s1487_s3 + $0x38] sm:$0xff] %vm372_vm1, %v920_v47  ;;  %v243_v48 = vpop.f32.mrb[7].mxu0 }
  0xe9   :  { %379 = vst.msk [vmem:[%s1487_s3 + $0x30] sm:$0xff] %vm372_vm1, %v243_v48  ;;  %974 = vmatprep.mubr.msk.f32.mxu1 %vm372_vm1, %v243_v48 }
  0xea   :  { %975 = vmatmul.mubr.msk.f32.gmra.mrb[6].mxu1 %vm372_vm1, %v920_v47 }
  0xeb   :  { %v923_v49 = vpop.f32.mrb[8].mxu0 }
  0xec   :  { %382 = vst.msk [vmem:[%s1487_s3 + $0x48] sm:$0xff] %vm372_vm1, %v923_v49  ;;  %v253_v50 = vpop.f32.mrb[9].mxu0 }
  0xed   :  { %381 = vst.msk [vmem:[%s1487_s3 + $0x40] sm:$0xff] %vm372_vm1, %v253_v50  ;;  %977 = vmatprep.mubr.msk.f32.mxu1 %vm372_vm1, %v253_v50 }
  0xee   :  { %978 = vmatmul.mubr.msk.f32.gmra.mrb[8].mxu1 %vm372_vm1, %v923_v49 }
  0xef   :  { %v926_v51 = vpop.f32.mrb[10].mxu0 }
  0xf0   :  { %384 = vst.msk [vmem:[%s1487_s3 + $0x58] sm:$0xff] %vm372_vm1, %v926_v51  ;;  %v263_v52 = vpop.f32.mrb[11].mxu0 }
  0xf1   :  { %383 = vst.msk [vmem:[%s1487_s3 + $0x50] sm:$0xff] %vm372_vm1, %v263_v52  ;;  %980 = vmatprep.mubr.msk.f32.mxu1 %vm372_vm1, %v263_v52 }
  0xf2   :  { %981 = vmatmul.mubr.msk.f32.gmra.mrb[10].mxu1 %vm372_vm1, %v926_v51 }
  0xf3   :  { %v929_v53 = vpop.f32.mrb[12].mxu0 }
  0xf4   :  { %386 = vst.msk [vmem:[%s1487_s3 + $0x68] sm:$0xff] %vm372_vm1, %v929_v53  ;;  %v273_v54 = vpop.f32.mrb[13].mxu0 }
  0xf5   :  { %385 = vst.msk [vmem:[%s1487_s3 + $0x60] sm:$0xff] %vm372_vm1, %v273_v54  ;;  %983 = vmatprep.mubr.msk.f32.mxu1 %vm372_vm1, %v273_v54 }
  0xf6   :  { %984 = vmatmul.mubr.msk.f32.gmra.mrb[12].mxu1 %vm372_vm1, %v929_v53 }
  0xf7   :  { %v932_v55 = vpop.f32.mrb[14].mxu0 }
  0xf8   :  { %388 = vst.msk [vmem:[%s1487_s3 + $0x78] sm:$0xff] %vm372_vm1, %v932_v55  ;;  %v283_v56 = vpop.f32.mrb[15].mxu0 }
  0xf9   :  { %387 = vst.msk [vmem:[%s1487_s3 + $0x70] sm:$0xff] %vm372_vm1, %v283_v56  ;;  %986 = vmatprep.mubr.msk.f32.mxu1 %vm372_vm1, %v283_v56 }
  0xfa   :  { %987 = vmatmul.mubr.msk.f32.gmra.mrb[14].mxu1 %vm372_vm1, %v932_v55 }
  0xfb   :  { %v935_v57 = vpop.f32.mrb[16].mxu0 }
  0xfc   :  { %390 = vst.msk [vmem:[%s1487_s3 + $0x88] sm:$0xff] %vm372_vm1, %v935_v57  ;;  %v293_v58 = vpop.f32.mrb[17].mxu0 }
  0xfd   :  { %389 = vst.msk [vmem:[%s1487_s3 + $0x80] sm:$0xff] %vm372_vm1, %v293_v58  ;;  %989 = vmatprep.mubr.msk.f32.mxu1 %vm372_vm1, %v293_v58 }
  0xfe   :  { %990 = vmatmul.mubr.msk.f32.gmra.mrb[16].mxu1 %vm372_vm1, %v935_v57 }
  0xff   :  { %v938_v59 = vpop.f32.mrb[18].mxu0 }
 0x100   :  { %392 = vst.msk [vmem:[%s1487_s3 + $0x98] sm:$0xff] %vm372_vm1, %v938_v59  ;;  %v303_v60 = vpop.f32.mrb[19].mxu0 }
 0x101   :  { %391 = vst.msk [vmem:[%s1487_s3 + $0x90] sm:$0xff] %vm372_vm1, %v303_v60  ;;  %992 = vmatprep.mubr.msk.f32.mxu1 %vm372_vm1, %v303_v60 }
 0x102   :  { %993 = vmatmul.mubr.msk.f32.gmra.mrb[18].mxu1 %vm372_vm1, %v938_v59 }
 0x103   :  { %v941_v61 = vpop.f32.mrb[20].mxu0 }
 0x104   :  { %394 = vst.msk [vmem:[%s1487_s3 + $0xa8] sm:$0xff] %vm372_vm1, %v941_v61  ;;  %v313_v62 = vpop.f32.mrb[21].mxu0 }
 0x105   :  { %393 = vst.msk [vmem:[%s1487_s3 + $0xa0] sm:$0xff] %vm372_vm1, %v313_v62  ;;  %995 = vmatprep.mubr.msk.f32.mxu1 %vm372_vm1, %v313_v62 }
 0x106   :  { %996 = vmatmul.mubr.msk.f32.gmra.mrb[20].mxu1 %vm372_vm1, %v941_v61 }
 0x107   :  { %v944_v63 = vpop.f32.mrb[22].mxu0 }
 0x108   :  { %396 = vst.msk [vmem:[%s1487_s3 + $0xb8] sm:$0xff] %vm372_vm1, %v944_v63  ;;  %v323_v0 = vpop.f32.mrb[23].mxu0 }
 0x109   :  { %395 = vst.msk [vmem:[%s1487_s3 + $0xb0] sm:$0xff] %vm372_vm1, %v323_v0  ;;  %998 = vmatprep.mubr.msk.f32.mxu1 %vm372_vm1, %v323_v0 }
 0x10a   :  { %999 = vmatmul.mubr.msk.f32.gmra.mrb[22].mxu1 %vm372_vm1, %v944_v63 }
 0x10b   :  { %v947_v1 = vpop.f32.mrb[24].mxu0 }
 0x10c   :  { %398 = vst.msk [vmem:[%s1487_s3 + $0xc8] sm:$0xff] %vm372_vm1, %v947_v1  ;;  %v333_v2 = vpop.f32.mrb[25].mxu0 }
 0x10d   :  { %397 = vst.msk [vmem:[%s1487_s3 + $0xc0] sm:$0xff] %vm372_vm1, %v333_v2  ;;  %1001 = vmatprep.mubr.msk.f32.mxu1 %vm372_vm1, %v333_v2 }
 0x10e   :  { %1002 = vmatmul.mubr.msk.f32.gmra.mrb[24].mxu1 %vm372_vm1, %v947_v1 }
 0x10f   :  { %v950_v3 = vpop.f32.mrb[26].mxu0 }
 0x110   :  { %400 = vst.msk [vmem:[%s1487_s3 + $0xd8] sm:$0xff] %vm372_vm1, %v950_v3  ;;  %v343_v4 = vpop.f32.mrb[27].mxu0 }
 0x111   :  { %399 = vst.msk [vmem:[%s1487_s3 + $0xd0] sm:$0xff] %vm372_vm1, %v343_v4  ;;  %1004 = vmatprep.mubr.msk.f32.mxu1 %vm372_vm1, %v343_v4 }
 0x112   :  { %1005 = vmatmul.mubr.msk.f32.gmra.mrb[26].mxu1 %vm372_vm1, %v950_v3 }
 0x113   :  { %v953_v5 = vpop.f32.mrb[28].mxu0 }
 0x114   :  { %402 = vst.msk [vmem:[%s1487_s3 + $0xe8] sm:$0xff] %vm372_vm1, %v953_v5  ;;  %v353_v6 = vpop.f32.mrb[29].mxu0 }
 0x115   :  { %401 = vst.msk [vmem:[%s1487_s3 + $0xe0] sm:$0xff] %vm372_vm1, %v353_v6  ;;  %1007 = vmatprep.mubr.msk.f32.mxu1 %vm372_vm1, %v353_v6 }
 0x116   :  { %1008 = vmatmul.mubr.msk.f32.gmra.mrb[28].mxu1 %vm372_vm1, %v953_v5 }
 0x117   :  { %v956_v7 = vpop.f32.mrb[30].mxu0 }
 0x118   :  { %404 = vst.msk [vmem:[%s1487_s3 + $0xf8] sm:$0xff] %vm372_vm1, %v956_v7  ;;  %v363_v8 = vpop.f32.mrb[31].mxu0 }
 0x119   :  { %403 = vst.msk [vmem:[%s1487_s3 + $0xf0] sm:$0xff] %vm372_vm1, %v363_v8  ;;  %1010 = vmatprep.mubr.msk.f32.mxu1 %vm372_vm1, %v363_v8 }
 0x11a   :  { %1011 = vmatmul.mubr.msk.f32.gmra.mrb[30].mxu1 %vm372_vm1, %v956_v7 }
 0x1b1   :  { %v967_v9 = vpop.f32.mrb[0].mxu1 }
 0x1b2   :  { %732 = vst.msk [vmem:[%s1488_s4 + $0x8] sm:$0xff] %vm730_vm2, %v967_v9  ;;  %v571_v10 = vpop.f32.mrb[1].mxu1 }
 0x1b3   :  { %731 = vst.msk [vmem:[%s1488_s4] sm:$0xff] %vm730_vm2, %v571_v10 }
 0x1b5   :  { %v970_v11 = vpop.f32.mrb[2].mxu1 }
 0x1b6   :  { %734 = vst.msk [vmem:[%s1488_s4 + $0x18] sm:$0xff] %vm730_vm2, %v970_v11  ;;  %v581_v12 = vpop.f32.mrb[3].mxu1 }
 0x1b7   :  { %733 = vst.msk [vmem:[%s1488_s4 + $0x10] sm:$0xff] %vm730_vm2, %v581_v12 }
 0x1b9   :  { %v973_v13 = vpop.f32.mrb[4].mxu1 }
 0x1ba   :  { %736 = vst.msk [vmem:[%s1488_s4 + $0x28] sm:$0xff] %vm730_vm2, %v973_v13  ;;  %v591_v14 = vpop.f32.mrb[5].mxu1 }
 0x1bb   :  { %735 = vst.msk [vmem:[%s1488_s4 + $0x20] sm:$0xff] %vm730_vm2, %v591_v14 }
 0x1bd   :  { %v976_v15 = vpop.f32.mrb[6].mxu1 }
 0x1be   :  { %738 = vst.msk [vmem:[%s1488_s4 + $0x38] sm:$0xff] %vm730_vm2, %v976_v15  ;;  %v601_v16 = vpop.f32.mrb[7].mxu1 }
 0x1bf   :  { %737 = vst.msk [vmem:[%s1488_s4 + $0x30] sm:$0xff] %vm730_vm2, %v601_v16 }
 0x1c1   :  { %v979_v17 = vpop.f32.mrb[8].mxu1 }
 0x1c2   :  { %740 = vst.msk [vmem:[%s1488_s4 + $0x48] sm:$0xff] %vm730_vm2, %v979_v17  ;;  %v611_v18 = vpop.f32.mrb[9].mxu1 }
 0x1c3   :  { %739 = vst.msk [vmem:[%s1488_s4 + $0x40] sm:$0xff] %vm730_vm2, %v611_v18 }
 0x1c5   :  { %v982_v19 = vpop.f32.mrb[10].mxu1 }
 0x1c6   :  { %742 = vst.msk [vmem:[%s1488_s4 + $0x58] sm:$0xff] %vm730_vm2, %v982_v19  ;;  %v621_v20 = vpop.f32.mrb[11].mxu1 }
 0x1c7   :  { %741 = vst.msk [vmem:[%s1488_s4 + $0x50] sm:$0xff] %vm730_vm2, %v621_v20 }
 0x1c9   :  { %v985_v21 = vpop.f32.mrb[12].mxu1 }
 0x1ca   :  { %744 = vst.msk [vmem:[%s1488_s4 + $0x68] sm:$0xff] %vm730_vm2, %v985_v21  ;;  %v631_v22 = vpop.f32.mrb[13].mxu1 }
 0x1cb   :  { %743 = vst.msk [vmem:[%s1488_s4 + $0x60] sm:$0xff] %vm730_vm2, %v631_v22 }
 0x1cd   :  { %v988_v23 = vpop.f32.mrb[14].mxu1 }
 0x1ce   :  { %746 = vst.msk [vmem:[%s1488_s4 + $0x78] sm:$0xff] %vm730_vm2, %v988_v23  ;;  %v641_v24 = vpop.f32.mrb[15].mxu1 }
 0x1cf   :  { %745 = vst.msk [vmem:[%s1488_s4 + $0x70] sm:$0xff] %vm730_vm2, %v641_v24 }
 0x1d1   :  { %v991_v25 = vpop.f32.mrb[16].mxu1 }
 0x1d2   :  { %748 = vst.msk [vmem:[%s1488_s4 + $0x88] sm:$0xff] %vm730_vm2, %v991_v25  ;;  %v651_v26 = vpop.f32.mrb[17].mxu1 }
 0x1d3   :  { %747 = vst.msk [vmem:[%s1488_s4 + $0x80] sm:$0xff] %vm730_vm2, %v651_v26 }
 0x1d5   :  { %v994_v27 = vpop.f32.mrb[18].mxu1 }
 0x1d6   :  { %750 = vst.msk [vmem:[%s1488_s4 + $0x98] sm:$0xff] %vm730_vm2, %v994_v27  ;;  %v661_v28 = vpop.f32.mrb[19].mxu1 }
 0x1d7   :  { %749 = vst.msk [vmem:[%s1488_s4 + $0x90] sm:$0xff] %vm730_vm2, %v661_v28 }
 0x1d9   :  { %v997_v29 = vpop.f32.mrb[20].mxu1 }
 0x1da   :  { %752 = vst.msk [vmem:[%s1488_s4 + $0xa8] sm:$0xff] %vm730_vm2, %v997_v29  ;;  %v671_v30 = vpop.f32.mrb[21].mxu1 }
 0x1db   :  { %751 = vst.msk [vmem:[%s1488_s4 + $0xa0] sm:$0xff] %vm730_vm2, %v671_v30 }
 0x1dd   :  { %v1000_v31 = vpop.f32.mrb[22].mxu1 }
 0x1de   :  { %754 = vst.msk [vmem:[%s1488_s4 + $0xb8] sm:$0xff] %vm730_vm2, %v1000_v31  ;;  %v681_v32 = vpop.f32.mrb[23].mxu1 }
 0x1df   :  { %753 = vst.msk [vmem:[%s1488_s4 + $0xb0] sm:$0xff] %vm730_vm2, %v681_v32 }
 0x1e1   :  { %v1003_v33 = vpop.f32.mrb[24].mxu1 }
 0x1e2   :  { %756 = vst.msk [vmem:[%s1488_s4 + $0xc8] sm:$0xff] %vm730_vm2, %v1003_v33  ;;  %v691_v34 = vpop.f32.mrb[25].mxu1 }
 0x1e3   :  { %755 = vst.msk [vmem:[%s1488_s4 + $0xc0] sm:$0xff] %vm730_vm2, %v691_v34 }
 0x1e5   :  { %v1006_v35 = vpop.f32.mrb[26].mxu1 }
 0x1e6   :  { %758 = vst.msk [vmem:[%s1488_s4 + $0xd8] sm:$0xff] %vm730_vm2, %v1006_v35  ;;  %v701_v36 = vpop.f32.mrb[27].mxu1 }
 0x1e7   :  { %757 = vst.msk [vmem:[%s1488_s4 + $0xd0] sm:$0xff] %vm730_vm2, %v701_v36 }
 0x1e9   :  { %v1009_v37 = vpop.f32.mrb[28].mxu1 }
 0x1ea   :  { %760 = vst.msk [vmem:[%s1488_s4 + $0xe8] sm:$0xff] %vm730_vm2, %v1009_v37  ;;  %v711_v38 = vpop.f32.mrb[29].mxu1 }
 0x1eb   :  { %759 = vst.msk [vmem:[%s1488_s4 + $0xe0] sm:$0xff] %vm730_vm2, %v711_v38 }
 0x1ed   :  { %v1012_v39 = vpop.f32.mrb[30].mxu1 }
 0x1ee   :  { %762 = vst.msk [vmem:[%s1488_s4 + $0xf8] sm:$0xff] %vm730_vm2, %v1012_v39  ;;  %v721_v40 = vpop.f32.mrb[31].mxu1 }
 0x1ef   :  { %761 = vst.msk [vmem:[%s1488_s4 + $0xf0] sm:$0xff] %vm730_vm2, %v721_v40 }

</bundles_post_ra>
